<compile_context>
chip_gen: v7x
topology: tpu7x:2x2x1
jax: 0.10.0
libtpu: 0.0.40
codegen_flags: <defaults>
</compile_context>

<pallas_src>
import jax
import jax.numpy as jnp
from jax.experimental import pallas as pl
from jax.experimental.pallas import tpu as pltpu

_SENTINEL = jnp.float32(1e30)  # "distance" for padded centroid columns


def _kmeans_predict_kernel(x_ref, ct_ref, csqh_ref, out_ref):
    # x_ref:    (TILE_N, D)           tile of samples (f32 or bf16)
    # ct_ref:   (D, K_PAD)            pre-transposed centroids (resident)
    # csqh_ref: (1, K_PAD)            0.5*||c||^2 (+sentinel on pad cols), f32
    # out_ref:  (1, TILE_N//128, 128) f32 nearest-centroid index (lane-dense)
    cross = jnp.dot(x_ref[...], ct_ref[...],
                    preferred_element_type=jnp.float32)            # (TN, Kp) MXU

    # 0.5*d(x,c) - 0.5*||x||^2 = 0.5*||c||^2 - x.c   (argmin-invariant)
    dists = csqh_ref[...] - cross                                  # (TN, Kp)

    # Argmin over clusters with first-index tie-break (matches sklearn).
    k_pad = dists.shape[-1]
    min_d = jnp.min(dists, axis=-1, keepdims=True)                 # (TN, 1)
    ids = jax.lax.broadcasted_iota(jnp.int32, dists.shape, 1)
    idx = jnp.min(jnp.where(dists == min_d, ids, k_pad), axis=-1)  # (TN,)

    out_ref[...] = idx.reshape(out_ref.shape).astype(jnp.float32)


def kmeans_predict(x, centroids, *, max_tile_n=4096):
    """Pallas KMeans.predict.  x: (N, n_dim), centroids: (K, n_dim) -> (N,) f32."""
    n, d = x.shape
    k, d2 = centroids.shape
    assert d == d2, "x must have n_dim columns"

    # Keep bf16 streaming as bf16 (halves x HBM traffic, native MXU path);
    # everything else goes to f32.
    if x.dtype != jnp.bfloat16:
        x = x.astype(jnp.float32)
    centroids = centroids.astype(x.dtype)

    # Centroid side (one-time, tiny):
    #   * pad K up to a lane multiple (>=128),
    #   * pre-transpose to (D, K_pad) so the MXU RHS is (contract, out),
    #   * precompute 0.5*||c||^2 in f32, sentinel on pad columns so padded
    #     clusters can never win the argmin.
    k_pad = max(128, pl.cdiv(k, 128) * 128)
    c_t = jnp.zeros((d, k_pad), x.dtype).at[:, :k].set(centroids.T)
    csq_half = jnp.zeros((k_pad,), jnp.float32).at[:k].set(
        0.5 * jnp.sum(jnp.square(centroids.astype(jnp.float32)), axis=-1))
    csq_half = jnp.where(jnp.arange(k_pad) < k, csq_half, _SENTINEL)[None, :]

    # Adaptive N tile (multiple of 128).  x itself is NOT padded: the ragged
    # last block's out-of-bounds rows are don't-care and sliced off below.
    tile_n = min(max_tile_n, pl.cdiv(n, 128) * 128)
    n_tiles = pl.cdiv(n, tile_n)
    sub = tile_n // 128

    # Explicit VMEM budget (v5e scoped default is only 16 MiB; v7x physical
    # is 64 MiB).  D lanes pad to 128 in VMEM, so count 128 not d.
    itemsize = jnp.dtype(x.dtype).itemsize
    lane_d = max(d, 128)
    est = (2 * tile_n * lane_d * itemsize        # x tile, double-buffered
           + 2 * lane_d * k_pad * itemsize       # resident centroids
           + 2 * 8 * k_pad * 4                   # 0.5*||c||^2
           + 2 * tile_n * 4                      # output tiles
           + 2 * tile_n * k_pad * 4)             # cross/dists intermediates
    vmem_bytes = min(max(int(1.5 * est), 32 * 1024 * 1024), 48 * 1024 * 1024)

    out = pl.pallas_call(
        _kmeans_predict_kernel,
        out_shape=jax.ShapeDtypeStruct((n_tiles, sub, 128), jnp.float32),
        grid_spec=pltpu.PrefetchScalarGridSpec(
            num_scalar_prefetch=0,
            grid=(n_tiles,),
            in_specs=[
                pl.BlockSpec((tile_n, d), lambda i: (i, 0)),   # x tile (ragged ok)
                pl.BlockSpec((d, k_pad), lambda i: (0, 0)),    # centroids^T (resident)
                pl.BlockSpec((1, k_pad), lambda i: (0, 0)),    # hoisted 0.5*||c||^2
            ],
            out_specs=pl.BlockSpec((1, sub, 128), lambda i: (i, 0, 0)),
        ),
        compiler_params=pltpu.CompilerParams(
            dimension_semantics=("parallel",),
            vmem_limit_bytes=vmem_bytes),
    )(x, c_t, csq_half)

    # (n_tiles, sub, 128) -> (n_tiles*tile_n,) row-major matches row order.
    return out.reshape(n_tiles * tile_n)[:n]


if __name__ == "__main__":
    # Small shapes implied by the module: n_dim feature vectors, num_clusters
    # centroids ("fitted" synthetically / deterministically in-script).
    N_DIM = 32          # self.n_dim
    NUM_CLUSTERS = 64   # self.num_clusters
    N_SAMPLES = 16      # rows of the 2-D input to forward()

    key = jax.random.PRNGKey(0)
    k_x, k_c = jax.random.split(key)
    x = jax.random.normal(k_x, (N_SAMPLES, N_DIM), dtype=jnp.float32)
    # Deterministic synthetic "cluster_centers_" (module would load/fit these).
    centroids = jax.random.normal(k_c, (NUM_CLUSTERS, N_DIM), dtype=jnp.float32)

    out = kmeans_predict(x, centroids)
    jax.block_until_ready(out)

    # Pure-JAX reference of the forward semantics (nearest centroid).
    d_ref = (jnp.sum(x * x, -1, keepdims=True)
             - 2.0 * x @ centroids.T
             + jnp.sum(centroids * centroids, -1)[None, :])
    ref_idx = jnp.argmin(d_ref, axis=-1).astype(jnp.float32)

    assert out.shape == (N_SAMPLES,) and out.dtype == jnp.float32
    assert bool(jnp.all((out >= 0) & (out < NUM_CLUSTERS)))
    # Exact index match, or (near-tie robustness across MXU vs XLA rounding)
    # the chosen centroid's distance equals the true minimum within eps.
    chosen = jnp.take_along_axis(d_ref, out.astype(jnp.int32)[:, None], axis=-1)[:, 0]
    ok = (out == ref_idx) | (chosen <= jnp.min(d_ref, axis=-1) + 1e-3)
    assert bool(jnp.all(ok))

    print("KERNEL_OK")
</pallas_src>

<mosaic_0001>
module attributes {stable_mosaic.version = 11 : i64} {
  func.func @_kmeans_predict_kernel(%arg0: i32, %arg1: memref<128x32xf32, #tpu.memory_space<vmem>>, %arg2: memref<32x128xf32, #tpu.memory_space<vmem>>, %arg3: memref<1x128xf32, #tpu.memory_space<vmem>>, %arg4: memref<1x1x128xf32, #tpu.memory_space<vmem>>) attributes {dimension_semantics = [#tpu.dimension_semantics<parallel>], iteration_bounds = array<i64: 1>, scalar_prefetch = 0 : i64, scratch_operands = 0 : i64, tpu.core_type = #tpu.core_type<tc>, window_params = [{transform_indices = @transform_0, window_bounds = array<i64: 128, 32>}, {pipeline_mode = #tpu.pipeline_mode<synchronous>, transform_indices = @transform_1, window_bounds = array<i64: 32, 128>}, {pipeline_mode = #tpu.pipeline_mode<synchronous>, transform_indices = @transform_2, window_bounds = array<i64: 1, 128>}, {transform_indices = @transform_3, window_bounds = array<i64: 1, 1, 128>}]} {
    %c0 = arith.constant 0 : index
    %c0_0 = arith.constant 0 : index
    %0 = vector.load %arg1[%c0, %c0_0] : memref<128x32xf32, #tpu.memory_space<vmem>>, vector<128x32xf32>
    %c0_1 = arith.constant 0 : index
    %c0_2 = arith.constant 0 : index
    %1 = vector.load %arg2[%c0_1, %c0_2] : memref<32x128xf32, #tpu.memory_space<vmem>>, vector<32x128xf32>
    %cst = arith.constant dense<0.000000e+00> : vector<128x128xf32>
    %2 = tpu.matmul %0, %1, %cst {dimension_numbers = #tpu.dot_dimension_numbers<[1], [0], [0], [1], [0, 0, 1, 1], [], []>} : vector<128x32xf32>, vector<32x128xf32>, vector<128x128xf32> -> vector<128x128xf32>
    %c0_3 = arith.constant 0 : index
    %c0_4 = arith.constant 0 : index
    %3 = vector.load %arg3[%c0_3, %c0_4] : memref<1x128xf32, #tpu.memory_space<vmem>>, vector<1x128xf32>
    %4 = vector.broadcast %3 : vector<1x128xf32> to vector<128x128xf32>
    %5 = arith.subf %4, %2 : vector<128x128xf32>
    %cst_5 = arith.constant dense<0x7F800000> : vector<128xf32>
    %6 = vector.multi_reduction <minimumf>, %5, %cst_5 [1] : vector<128x128xf32> to vector<128xf32>
    %7 = vector.shape_cast %6 : vector<128xf32> to vector<128x1xf32>
    %8 = tpu.iota {dimensions = array<i32: 1>} : vector<128x128xi32>
    %9 = vector.broadcast %7 : vector<128x1xf32> to vector<128x128xf32>
    %10 = arith.cmpf oeq, %5, %9 : vector<128x128xf32>
    %c128_i32 = arith.constant 128 : i32
    %11 = vector.broadcast %c128_i32 : i32 to vector<128x128xi32>
    %12 = arith.select %10, %8, %11 : vector<128x128xi1>, vector<128x128xi32>
    %cst_6 = arith.constant dense<2147483647> : vector<128xi32>
    %13 = vector.multi_reduction <minsi>, %12, %cst_6 [1] : vector<128x128xi32> to vector<128xi32>
    %14 = vector.shape_cast %13 : vector<128xi32> to vector<1x1x128xi32>
    %15 = arith.sitofp %14 : vector<1x1x128xi32> to vector<1x1x128xf32>
    %c0_7 = arith.constant 0 : index
    %c0_8 = arith.constant 0 : index
    %c0_9 = arith.constant 0 : index
    %16 = vector.load %arg4[%c0_7, %c0_8, %c0_9] : memref<1x1x128xf32, #tpu.memory_space<vmem>>, vector<1x1x128xf32>
    tpu.vector_store %arg4[%c0_7, %c0_8, %c0_9], %15 {strides = array<i32>} : memref<1x1x128xf32, #tpu.memory_space<vmem>>, vector<1x1x128xf32>,
    return
  }
  func.func @transform_0(%arg0: i32) -> (i32, i32) {
    %c0_i32 = arith.constant 0 : i32
    %c0_i32_0 = arith.constant 0 : i32
    return %arg0, %c0_i32 : i32, i32
  }
  func.func @transform_1(%arg0: i32) -> (i32, i32) {
    %c0_i32 = arith.constant 0 : i32
    %c0_i32_0 = arith.constant 0 : i32
    %c0_i32_1 = arith.constant 0 : i32
    return %c0_i32, %c0_i32_0 : i32, i32
  }
  func.func @transform_2(%arg0: i32) -> (i32, i32) {
    %c0_i32 = arith.constant 0 : i32
    %c0_i32_0 = arith.constant 0 : i32
    %c0_i32_1 = arith.constant 0 : i32
    return %c0_i32, %c0_i32_0 : i32, i32
  }
  func.func @transform_3(%arg0: i32) -> (i32, i32, i32) {
    %c0_i32 = arith.constant 0 : i32
    %c0_i32_0 = arith.constant 0 : i32
    %c0_i32_1 = arith.constant 0 : i32
    return %arg0, %c0_i32, %c0_i32_0 : i32, i32, i32
  }
}

</mosaic_0001>

<bundles_post_ra>
// kernel: tpu_custom_call.1
= control target key start
LH: loop header
LB: loop body
LE: loop exit
PB: predicated region body
PF: predicated region fallthrough
CT: control target
= control target key end

     0   :  { %8 = vsyncpa [#allocation3], 0  ;;  %s1335_s0 = inlined_call_operand.hbm [shape: f32[16,32], index: 0, kind: input, shape index: {}]   ;;  %s1336_s1 = inlined_call_operand.hbm [shape: f32[32,128], index: 1, kind: input, shape index: {}]   ;;  %s1337_s2 = inlined_call_operand.vmem [shape: f32[1,128], index: 2, kind: input, shape index: {}]   ;;  %s1338_s3 = inlined_call_operand.hbm [shape: f32[1,1,128], index: 3, kind: output, shape index: {}]  }
   0x1   :  { %9 = vsyncpa [#allocation6], 0 }
   0x2   :  { %10 = vsyncpa [#allocation4], 0 }
   0x3   :  { %15 = vsyncadd [#allocation3], 1792  ;;  %s887_s12 = smov [#allocation2]   ;;  %s815_s16 = scalar_lea.hbm %s1335_s0, 256 }
   0x4   :  { %s16_s13 = sshll.u32 %s887_s12, 4  ;;  %p816_p0 = scmp.ne.s32.totalorder %s1335_s0, %s815_s16  ;;  %s17_s13 = int_to_ptr.vmem [resolvable:$true] %s16_s13 }
   0x5   :  { %p819_p1 = scmp.lt.u32.totalorder %s815_s16, %s1335_s0 }
   0x7   :  { %p821_p2 = pnand %p819_p1, %p816_p0 }
   0x9   :  { %824 = shalt.err (!%p821_p2)
}
   0xa   :  { %s825_s21 = scalar_lea.vmem %s17_s13, 256  ;;  %s829_s22 = scalar_lea.vmem %s17_s13, 2048 }
   0xb   :  { %p826_p3 = scmp.ne.s32.totalorder %s17_s13, %s825_s21  ;;  %p830_p4 = scmp.lt.s32.totalorder %s17_s13, %s17_s13 }
   0xc   :  { %p831_p5 = scmp.lt.s32.totalorder %s829_s22, %s825_s21 }
   0xe   :  { %p832_p6 = por %p831_p5, %p830_p4 }
  0x10   :  { %p833_p7 = pnand %p832_p6, %p826_p3 }
  0x12   :  { %836 = shalt.err (!%p833_p7)
}
  0x13   :  { %s888_s23 = smov 128   ;;  %s889_s24 = smov 8  }
  0x14   :  { %22 = dma.hbm_to_vmem [thread:$0]  %s1335_s0, 256, %s17_s13, [#allocation3], %s888_s23, %s888_s23, %s889_s24  }
  0x15   :  { %s890_s27 = smov [#allocation5]   ;;  %s837_s4 = scalar_lea.hbm %s1336_s1, 512 }
  0x16   :  { %s28_s28 = sshll.u32 %s890_s27, 4  ;;  %p838_p8 = scmp.ne.s32.totalorder %s1336_s1, %s837_s4  ;;  %s29_s28 = int_to_ptr.vmem [resolvable:$true] %s28_s28 }
  0x17   :  { %p841_p9 = scmp.lt.u32.totalorder %s837_s4, %s1336_s1 }
  0x19   :  { %p843_p10 = pnand %p841_p9, %p838_p8 }
  0x1b   :  { %846 = shalt.err (!%p843_p10)
}
  0x1c   :  { %s847_s9 = scalar_lea.vmem %s29_s28, 512  ;;  %p852_p12 = scmp.lt.s32.totalorder %s29_s28, %s29_s28 }
  0x1d   :  { %p848_p11 = scmp.ne.s32.totalorder %s29_s28, %s847_s9  ;;  %p853_p13 = scmp.lt.s32.totalorder %s847_s9, %s847_s9 }
  0x1f   :  { %p854_p0 = por %p853_p13, %p852_p12 }
  0x21   :  { %p855_p1 = pnand %p854_p0, %p848_p11 }
  0x23   :  { %858 = shalt.err (!%p855_p1)
}
  0x24   :  { %34 = dma.hbm_to_vmem [thread:$0]  %s1336_s1, 512, %s29_s28, [#allocation6], %s888_s23, %s888_s23, %s889_s24  }
  0x25   :  { %881 = dma.done.wait [#allocation3], 2048  }
  0x26   :  { %882 = vsyncadd [#allocation3], 4294965248 }
  0x27   :  { %883 = dma.done.wait [#allocation6], 512  }
  0x28   :  { %884 = vsyncadd [#allocation6], 4294966784  ;;  %vm63_vm0 = vcmask 261120   ;;  %v59_v0 = vld [vmem:[#allocation5] sm:$0xff]  ;;  %v60_v1 = vld [vmem:[#allocation5 + $0x8] sm:$0xff]  ;;  %v312_v55 = vlaneseq }
  0x29   :  { %v61_v2 = vld [vmem:[#allocation5 + $0x10] sm:$0xff]  ;;  %v798_v3 = vpack.c.bf16 %v60_v1, %v59_v0  ;;  %v62_v4 = vld [vmem:[#allocation5 + $0x18] sm:$0xff]  ;;  %v43_v5 = vld [vmem:[#allocation2] sm:$0xff] }
  0x2a   :  { %v51_v6 = vld [vmem:[#allocation2 + $0x40] sm:$0xff]  ;;  %v802_v7 = vpack.c.bf16 %v62_v4, %v61_v2  ;;  %774 = vmatprep.mubr.msk.f32.mxu0 %vm63_vm0, %v43_v5  ;;  %v44_v8 = vld [vmem:[#allocation2 + $0x8] sm:$0xff]  ;;  %v45_v10 = vld [vmem:[#allocation2 + $0x10] sm:$0xff]  ;;  %v980_v56 = vand.u32 127, %v312_v55 }
  0x2b   :  { %786 = vmatprep.mubr.msk.f32.mxu1 %vm63_vm0, %v51_v6  ;;  %799 = vmatprep.subr.bf16.mxu0 %v798_v3  ;;  %v52_v9 = vld [vmem:[#allocation2 + $0x48] sm:$0xff]  ;;  %v53_v11 = vld [vmem:[#allocation2 + $0x50] sm:$0xff]  ;;  %v46_v12 = vld [vmem:[#allocation2 + $0x18] sm:$0xff] }
  0x2c   :  { %806 = vmatprep.subr.bf16.mxu1 %v798_v3  ;;  %801 = vmatpush3.bf16.msra.mxu0 %v798_v3  ;;  %v54_v13 = vld [vmem:[#allocation2 + $0x58] sm:$0xff]  ;;  %v47_v14 = vld [vmem:[#allocation2 + $0x20] sm:$0xff]  ;;  %v48_v16 = vld [vmem:[#allocation2 + $0x28] sm:$0xff] }
  0x2d   :  { %808 = vmatpush3.bf16.msra.mxu1 %v798_v3  ;;  %803 = vmatprep.subr.bf16.mxu0 %v802_v7  ;;  %v55_v15 = vld [vmem:[#allocation2 + $0x60] sm:$0xff]  ;;  %v56_v17 = vld [vmem:[#allocation2 + $0x68] sm:$0xff]  ;;  %v49_v18 = vld [vmem:[#allocation2 + $0x30] sm:$0xff] }
  0x2e   :  { %807 = vmatprep.subr.bf16.mxu1 %v802_v7  ;;  %v57_v19 = vld [vmem:[#allocation2 + $0x70] sm:$0xff]  ;;  %v50_v20 = vld [vmem:[#allocation2 + $0x38] sm:$0xff]  ;;  %v745_v22 = vld [vmem:[%s1337_s2] ss:$0 sm:$0xff]  ;;  %s891_s2 = smov [#allocation7]  }
  0x2f   :  { %v58_v21 = vld [vmem:[#allocation2 + $0x78] sm:$0xff]  ;;  %s719_s12 = sshll.u32 %s891_s2, 4  ;;  %s720_s12 = int_to_ptr.vmem [resolvable:$true] %s719_s12 }
  0x30   :  { %805 = vmatpush3.bf16.msra.mxu0 %v802_v7  ;;  %s859_s13 = scalar_lea.vmem %s720_s12, 16  ;;  %s863_s14 = scalar_lea.vmem %s720_s12, 32 }
  0x31   :  { %809 = vmatpush3.bf16.msra.mxu1 %v802_v7  ;;  %p860_p2 = scmp.ne.s32.totalorder %s720_s12, %s859_s13  ;;  %p864_p3 = scmp.lt.s32.totalorder %s720_s12, %s720_s12 }
  0x32   :  { %p865_p4 = scmp.lt.s32.totalorder %s863_s14, %s859_s13 }
  0x33   :  { %775 = vmatmul.mubr.msk.f32.vlgmr.msra.gmra.mrb[0].mxu0 %vm63_vm0, %v44_v8 }
  0x34   :  { %787 = vmatmul.mubr.msk.f32.vlgmr.msra.gmra.mrb[0].mxu1 %vm63_vm0, %v52_v9  ;;  %777 = vmatprep.mubr.msk.f32.mxu0 %vm63_vm0, %v45_v10  ;;  %p866_p5 = por %p865_p4, %p864_p3 }
  0x35   :  { %789 = vmatprep.mubr.msk.f32.mxu1 %vm63_vm0, %v53_v11 }
  0x36   :  { %p867_p6 = pnand %p866_p5, %p860_p2 }
  0x37   :  { %778 = vmatmul.mubr.msk.f32.gmra.mrb[2].mxu0 %vm63_vm0, %v46_v12 }
  0x38   :  { %790 = vmatmul.mubr.msk.f32.gmra.mrb[2].mxu1 %vm63_vm0, %v54_v13  ;;  %780 = vmatprep.mubr.msk.f32.mxu0 %vm63_vm0, %v47_v14 }
  0x39   :  { %792 = vmatprep.mubr.msk.f32.mxu1 %vm63_vm0, %v55_v15 }
  0x3b   :  { %781 = vmatmul.mubr.msk.f32.gmra.mrb[4].mxu0 %vm63_vm0, %v48_v16 }
  0x3c   :  { %793 = vmatmul.mubr.msk.f32.gmra.mrb[4].mxu1 %vm63_vm0, %v56_v17  ;;  %783 = vmatprep.mubr.msk.f32.mxu0 %vm63_vm0, %v49_v18 }
  0x3d   :  { %795 = vmatprep.mubr.msk.f32.mxu1 %vm63_vm0, %v57_v19 }
  0x3f   :  { %784 = vmatmul.mubr.msk.f32.gmra.mrb[6].mxu0 %vm63_vm0, %v50_v20 }
  0x40   :  { %796 = vmatmul.mubr.msk.f32.gmra.mrb[6].mxu1 %vm63_vm0, %v58_v21 }
 0x106   :  { %v776_v23 = vpop.f32.mrb[0].mxu0 }
 0x107   :  { %v788_v24 = vpop.f32.mrb[0].mxu1  ;;  %v265_v25 = vsub.f32 %v745_v22, %v776_v23  ;;  %v178_v27 = vpop.f32.mrb[1].mxu0 }
 0x108   :  { %v273_v26 = vsub.f32 %v745_v22, %v788_v24  ;;  %v218_v28 = vpop.f32.mrb[1].mxu1  ;;  %v264_v31 = vsub.f32 %v745_v22, %v178_v27 }
 0x109   :  { %282 = vmin.xlane.f32.xlu0 %v265_v25  ;;  %v272_v38 = vsub.f32 %v745_v22, %v218_v28 }
 0x10a   :  { %298 = vmin.xlane.f32.xlu1 %v273_v26  ;;  %v779_v29 = vpop.f32.mrb[2].mxu0 }
 0x10b   :  { %v791_v30 = vpop.f32.mrb[2].mxu1  ;;  %v267_v32 = vsub.f32 %v745_v22, %v779_v29  ;;  %v188_v33 = vpop.f32.mrb[3].mxu0 }
 0x10c   :  { %v228_v34 = vpop.f32.mrb[3].mxu1  ;;  %v275_v35 = vsub.f32 %v745_v22, %v791_v30  ;;  %v266_v43 = vsub.f32 %v745_v22, %v188_v33 }
 0x10d   :  { %280 = vmin.xlane.f32.xlu0 %v264_v31  ;;  %v274_v44 = vsub.f32 %v745_v22, %v228_v34 }
 0x10e   :  { %286 = vmin.xlane.f32.xlu1 %v267_v32  ;;  %v782_v36 = vpop.f32.mrb[4].mxu0 }
 0x10f   :  { %v794_v37 = vpop.f32.mrb[4].mxu1  ;;  %v198_v39 = vpop.f32.mrb[5].mxu0  ;;  %v955_v47 = vsub.f32 %v745_v22, %v782_v36 }
 0x110   :  { %v238_v40 = vpop.f32.mrb[5].mxu1  ;;  %v957_v48 = vsub.f32 %v745_v22, %v198_v39  ;;  %v965_v51 = vsub.f32 %v745_v22, %v794_v37 }
 0x111   :  { %296 = vmin.xlane.f32.xlu0 %v272_v38  ;;  %v969_v52 = vsub.f32 %v745_v22, %v238_v40 }
 0x112   :  { %302 = vmin.xlane.f32.xlu1 %v275_v35  ;;  %v785_v41 = vpop.f32.mrb[6].mxu0 }
 0x113   :  { %v797_v42 = vpop.f32.mrb[6].mxu1  ;;  %v208_v45 = vpop.f32.mrb[7].mxu0  ;;  %v961_v49 = vsub.f32 %v745_v22, %v785_v41 }
 0x114   :  { %v248_v46 = vpop.f32.mrb[7].mxu1  ;;  %v963_v50 = vsub.f32 %v745_v22, %v208_v45  ;;  %v971_v53 = vsub.f32 %v745_v22, %v797_v42 }
 0x115   :  { %300 = vmin.xlane.f32.xlu0 %v274_v44  ;;  %v975_v54 = vsub.f32 %v745_v22, %v248_v46 }
 0x116   :  { %284 = vmin.xlane.f32.xlu1 %v266_v43 }
 0x119   :  { %288 = vmin.xlane.f32.xlu0 %v957_v48 }
 0x11a   :  { %290 = vmin.xlane.f32.xlu1 %v955_v47 }
 0x11d   :  { %292 = vmin.xlane.f32.xlu0 %v963_v50 }
 0x11e   :  { %294 = vmin.xlane.f32.xlu1 %v961_v49 }
 0x121   :  { %304 = vmin.xlane.f32.xlu0 %v969_v52 }
 0x122   :  { %306 = vmin.xlane.f32.xlu1 %v965_v51 }
 0x125   :  { %308 = vmin.xlane.f32.xlu0 %v975_v54 }
 0x126   :  { %310 = vmin.xlane.f32.xlu1 %v971_v53 }
 0x196   :  { %v283_v58 = vpop.xlane.xlu0 %282 }
 0x197   :  { %v299_v57 = vpop.xlane.xlu1 %298  ;;  %vm315_vm2 = vcmp.eq.f32.partialorder %v265_v25, %v283_v58 }
 0x198   :  { %vm323_vm1 = vcmp.eq.f32.partialorder %v273_v26, %v299_v57  ;;  %v986_v60 = vsel %vm315_vm2, %v980_v56, 128 }
 0x199   :  { %v983_v59 = vsel %vm323_vm1, %v980_v56, 128  ;;  %v361_v61 = vshra.s32 %v986_v60, 16 }
 0x19a   :  { %v281_v62 = vpop.xlane.xlu0 %280  ;;  %v473_v1 = vshra.s32 %v983_v59, 16 }
 0x19b   :  { %v287_v63 = vpop.xlane.xlu1 %286  ;;  %vm314_vm3 = vcmp.eq.f32.partialorder %v264_v31, %v281_v62  ;;  %v989_v0 = vcvt.s32.f32 %v361_v61  ;;  %v360_v61 = vand.u32 65535, %v986_v60  ;;  %v472_v62 = vand.u32 65535, %v983_v59 }
 0x19c   :  { %vm317_vm4 = vcmp.eq.f32.partialorder %v267_v32, %v287_v63  ;;  %v993_v2 = vsel %vm314_vm3, %v980_v56, 128  ;;  %v1001_v8 = vcvt.s32.f32 %v473_v1 }
 0x19d   :  { %v996_v3 = vsel %vm317_vm4, %v980_v56, 128  ;;  %364 = vmin.xlane.f32.xlu1 %v989_v0  ;;  %v347_v4 = vshra.s32 %v993_v2, 16  ;;  %v346_v63 = vand.u32 65535, %v993_v2  ;;  %v474_v60 = vcvt.s32.f32 %v472_v62 }
 0x19e   :  { %v297_v5 = vpop.xlane.xlu0 %296  ;;  %v389_v7 = vshra.s32 %v996_v3, 16 }
 0x19f   :  { %v303_v6 = vpop.xlane.xlu1 %302  ;;  %vm322_vm5 = vcmp.eq.f32.partialorder %v272_v38, %v297_v5  ;;  %v1003_v9 = vcvt.s32.f32 %v347_v4  ;;  %v362_v4 = vcvt.s32.f32 %v360_v61  ;;  %v348_v59 = vcvt.s32.f32 %v346_v63 }
 0x1a0   :  { %vm325_vm6 = vcmp.eq.f32.partialorder %v275_v35, %v303_v6  ;;  %v1006_v10 = vsel %vm322_vm5, %v980_v56, 128  ;;  %v1014_v15 = vcvt.s32.f32 %v389_v7  ;;  %v388_v6 = vand.u32 65535, %v996_v3 }
 0x1a1   :  { %v1009_v11 = vsel %vm325_vm6, %v980_v56, 128  ;;  %476 = vmin.xlane.f32.xlu1 %v1001_v8  ;;  %350 = vmin.xlane.f32.xlu0 %v1003_v9  ;;  %v459_v12 = vshra.s32 %v1006_v10, 16  ;;  %v458_v7 = vand.u32 65535, %v1006_v10 }
 0x1a2   :  { %v301_v13 = vpop.xlane.xlu0 %300  ;;  %v501_v17 = vshra.s32 %v1009_v11, 16  ;;  %v500_v3 = vand.u32 65535, %v1009_v11 }
 0x1a3   :  { %v285_v14 = vpop.xlane.xlu1 %284  ;;  %vm324_vm7 = vcmp.eq.f32.partialorder %v274_v44, %v301_v13  ;;  %v1016_v16 = vcvt.s32.f32 %v459_v12 }
 0x1a4   :  { %vm316_vm8 = vcmp.eq.f32.partialorder %v266_v43, %v285_v14  ;;  %v1020_v18 = vsel %vm324_vm7, %v980_v56, 128  ;;  %v1031_v24 = vcvt.s32.f32 %v501_v17 }
 0x1a5   :  { %v1023_v19 = vsel %vm316_vm8, %v980_v56, 128  ;;  %392 = vmin.xlane.f32.xlu1 %v1014_v15  ;;  %462 = vmin.xlane.f32.xlu0 %v1016_v16  ;;  %v487_v23 = vshra.s32 %v1020_v18, 16  ;;  %v486_v11 = vand.u32 65535, %v1020_v18 }
 0x1a6   :  { %v375_v20 = vshra.s32 %v1023_v19, 16  ;;  %v289_v22 = vpop.xlane.xlu0 %288  ;;  %v374_v10 = vand.u32 65535, %v1023_v19 }
 0x1a7   :  { %v291_v21 = vpop.xlane.xlu1 %290  ;;  %vm318_vm10 = vcmp.eq.f32.partialorder %v957_v48, %v289_v22  ;;  %v1044_v31 = vcvt.s32.f32 %v487_v23 }
 0x1a8   :  { %vm319_vm9 = vcmp.eq.f32.partialorder %v955_v47, %v291_v21  ;;  %v1033_v25 = vcvt.s32.f32 %v375_v20  ;;  %v1039_v27 = vsel %vm318_vm10, %v980_v56, 128  ;;  %v390_v20 = vcvt.s32.f32 %v388_v6 }
 0x1a9   :  { %v1036_v26 = vsel %vm319_vm9, %v980_v56, 128  ;;  %504 = vmin.xlane.f32.xlu1 %v1031_v24  ;;  %v403_v33 = vshra.s32 %v1039_v27, 16  ;;  %v460_v21 = vcvt.s32.f32 %v458_v7  ;;  %v402_v18 = vand.u32 65535, %v1039_v27 }
 0x1aa   :  { %378 = vmin.xlane.f32.xlu0 %v1033_v25  ;;  %v417_v28 = vshra.s32 %v1036_v26, 16  ;;  %v293_v30 = vpop.xlane.xlu0 %292  ;;  %v416_v19 = vand.u32 65535, %v1036_v26 }
 0x1ab   :  { %v295_v29 = vpop.xlane.xlu1 %294  ;;  %vm320_vm12 = vcmp.eq.f32.partialorder %v963_v50, %v293_v30  ;;  %v1065_v41 = vcvt.s32.f32 %v403_v33 }
 0x1ac   :  { %vm321_vm11 = vcmp.eq.f32.partialorder %v961_v49, %v295_v29  ;;  %v1048_v32 = vcvt.s32.f32 %v417_v28  ;;  %v1055_v35 = vsel %vm320_vm12, %v980_v56, 128  ;;  %v502_v28 = vcvt.s32.f32 %v500_v3 }
 0x1ad   :  { %v1052_v34 = vsel %vm321_vm11, %v980_v56, 128  ;;  %v431_v39 = vshra.s32 %v1055_v35, 16  ;;  %v376_v29 = vcvt.s32.f32 %v374_v10  ;;  %v430_v27 = vand.u32 65535, %v1055_v35 }
 0x1ae   :  { %420 = vmin.xlane.f32.xlu1 %v1048_v32  ;;  %490 = vmin.xlane.f32.xlu0 %v1044_v31  ;;  %v445_v36 = vshra.s32 %v1052_v34, 16  ;;  %v305_v38 = vpop.xlane.xlu0 %304  ;;  %v444_v26 = vand.u32 65535, %v1052_v34 }
 0x1af   :  { %v307_v37 = vpop.xlane.xlu1 %306  ;;  %vm326_vm14 = vcmp.eq.f32.partialorder %v969_v52, %v305_v38  ;;  %v1076_v47 = vcvt.s32.f32 %v431_v39 }
 0x1b0   :  { %vm327_vm13 = vcmp.eq.f32.partialorder %v965_v51, %v307_v37  ;;  %v1063_v40 = vcvt.s32.f32 %v445_v36  ;;  %v1071_v43 = vsel %vm326_vm14, %v980_v56, 128  ;;  %v418_v36 = vcvt.s32.f32 %v416_v19 }
 0x1b1   :  { %v1068_v42 = vsel %vm327_vm13, %v980_v56, 128  ;;  %v515_v49 = vshra.s32 %v1071_v43, 16  ;;  %v488_v37 = vcvt.s32.f32 %v486_v11  ;;  %v514_v35 = vand.u32 65535, %v1071_v43 }
 0x1b2   :  { %448 = vmin.xlane.f32.xlu1 %v1063_v40  ;;  %406 = vmin.xlane.f32.xlu0 %v1065_v41  ;;  %v529_v44 = vshra.s32 %v1068_v42, 16  ;;  %v309_v46 = vpop.xlane.xlu0 %308  ;;  %v528_v34 = vand.u32 65535, %v1068_v42 }
 0x1b3   :  { %v311_v45 = vpop.xlane.xlu1 %310  ;;  %vm328_vm0 = vcmp.eq.f32.partialorder %v975_v54, %v309_v46  ;;  %v516_v63 = vcvt.s32.f32 %v514_v35 }
 0x1b4   :  { %vm329_vm15 = vcmp.eq.f32.partialorder %v971_v53, %v311_v45  ;;  %v1080_v48 = vcvt.s32.f32 %v529_v44  ;;  %v1087_v51 = vsel %vm328_vm0, %v980_v56, 128  ;;  %v1094_v53 = vcvt.s32.f32 %v515_v49 }
 0x1b5   :  { %v1084_v50 = vsel %vm329_vm15, %v980_v56, 128  ;;  %v543_v54 = vshra.s32 %v1087_v51, 16  ;;  %v446_v44 = vcvt.s32.f32 %v444_v26  ;;  %v404_v45 = vcvt.s32.f32 %v402_v18 }
 0x1b6   :  { %532 = vmin.xlane.f32.xlu1 %v1080_v48  ;;  %434 = vmin.xlane.f32.xlu0 %v1076_v47  ;;  %v557_v52 = vshra.s32 %v1084_v50, 16  ;;  %v556_v42 = vand.u32 65535, %v1084_v50  ;;  %v542_v43 = vand.u32 65535, %v1087_v51 }
 0x1b7   :  { %v1099_v58 = vcvt.s32.f32 %v543_v54  ;;  %v432_v54 = vcvt.s32.f32 %v430_v27 }
 0x1b8   :  { %v1092_v57 = vcvt.s32.f32 %v557_v52  ;;  %v530_v52 = vcvt.s32.f32 %v528_v34  ;;  %v558_v62 = vcvt.s32.f32 %v556_v42 }
 0x1ba   :  { %560 = vmin.xlane.f32.xlu1 %v1092_v57  ;;  %518 = vmin.xlane.f32.xlu0 %v1094_v53 }
 0x1be   :  { %546 = vmin.xlane.f32.xlu0 %v1099_v58 }
 0x22a   :  { %v1105_v1 = vpop.xlane.xlu1 %364 }
 0x22b   :  { %vm366_vm1 = vcmp.eq.f32.partialorder %v989_v0, %v1105_v1  ;;  %v371_v6 = vcvt.f32.s32 %v1105_v1 }
 0x22c   :  { %v367_v5 = vsel %vm366_vm1, %v362_v4, inf  ;;  %vm611_vm1 = vcmask 130112  }
 0x22d   :  { %368 = vmin.xlane.f32.xlu1 %v367_v5  ;;  %v544_v5 = vcvt.s32.f32 %v542_v43 }
 0x22e   :  { %v1111_v12 = vpop.xlane.xlu1 %476  ;;  %v1113_v13 = vpop.xlane.xlu0 %350 }
 0x22f   :  { %vm478_vm2 = vcmp.eq.f32.partialorder %v1001_v8, %v1111_v12  ;;  %vm352_vm3 = vcmp.eq.f32.partialorder %v1003_v9, %v1113_v13  ;;  %v483_v7 = vcvt.f32.s32 %v1111_v12 }
 0x230   :  { %v479_v2 = vsel %vm478_vm2, %v474_v60, inf  ;;  %v353_v0 = vsel %vm352_vm3, %v348_v59, inf  ;;  %v372_v59 = vshll.u32 %v371_v6, 16  ;;  %vm618_vm2 = vcmask 195712  }
 0x231   :  { %480 = vmin.xlane.f32.xlu1 %v479_v2  ;;  %354 = vmin.xlane.f32.xlu0 %v353_v0  ;;  %v357_v2 = vcvt.f32.s32 %v1113_v13  ;;  %v1193_v12 = vshll.u32 %v483_v7, 16  ;;  %vm625_vm3 = vcmask 261312  }
 0x232   :  { %v1121_v14 = vpop.xlane.xlu1 %392  ;;  %v1123_v17 = vpop.xlane.xlu0 %462 }
 0x233   :  { %vm394_vm4 = vcmp.eq.f32.partialorder %v1014_v15, %v1121_v14  ;;  %vm464_vm5 = vcmp.eq.f32.partialorder %v1016_v16, %v1123_v17  ;;  %v399_v0 = vcvt.f32.s32 %v1121_v14  ;;  %v358_v14 = vshll.u32 %v357_v2, 16 }
 0x234   :  { %v395_v8 = vsel %vm394_vm4, %v390_v20, inf  ;;  %v465_v9 = vsel %vm464_vm5, %v460_v21, inf  ;;  %vm632_vm4 = vcmask 326912   ;;  %vm639_vm5 = vcmask 392512  }
 0x235   :  { %396 = vmin.xlane.f32.xlu1 %v395_v8  ;;  %466 = vmin.xlane.f32.xlu0 %v465_v9  ;;  %v400_v11 = vshll.u32 %v399_v0, 16 }
 0x236   :  { %v1131_v22 = vpop.xlane.xlu1 %504 }
 0x237   :  { %v1133_v23 = vpop.xlane.xlu0 %378  ;;  %vm506_vm6 = vcmp.eq.f32.partialorder %v1031_v24, %v1131_v22  ;;  %v511_v10 = vcvt.f32.s32 %v1131_v22 }
 0x238   :  { %vm380_vm7 = vcmp.eq.f32.partialorder %v1033_v25, %v1133_v23  ;;  %v507_v15 = vsel %vm506_vm6, %v502_v28, inf  ;;  %v385_v1 = vcvt.f32.s32 %v1133_v23  ;;  %vm646_vm6 = vcmask 458112  }
 0x239   :  { %v381_v16 = vsel %vm380_vm7, %v376_v29, inf  ;;  %508 = vmin.xlane.f32.xlu1 %v507_v15  ;;  %v1203_v23 = vshll.u32 %v511_v10, 16  ;;  %v1207_v29 = vadd.s32 4294967224, %v980_v56  ;;  %vm653_vm7 = vcmask 523712  }
 0x23a   :  { %382 = vmin.xlane.f32.xlu0 %v381_v16  ;;  %v386_v15 = vshll.u32 %v385_v1, 16 }
 0x23b   :  { %v1141_v30 = vpop.xlane.xlu1 %420  ;;  %v1143_v33 = vpop.xlane.xlu0 %490 }
 0x23c   :  { %vm422_vm8 = vcmp.eq.f32.partialorder %v1048_v32, %v1141_v30  ;;  %vm492_vm9 = vcmp.eq.f32.partialorder %v1044_v31, %v1143_v33  ;;  %v497_v21 = vcvt.f32.s32 %v1143_v33 }
 0x23d   :  { %v423_v24 = vsel %vm422_vm8, %v418_v36, inf  ;;  %v493_v25 = vsel %vm492_vm9, %v488_v37, inf  ;;  %vm660_vm8 = vcmask 589312   ;;  %vm667_vm9 = vcmask 654912  }
 0x23e   :  { %424 = vmin.xlane.f32.xlu1 %v423_v24  ;;  %494 = vmin.xlane.f32.xlu0 %v493_v25  ;;  %v1211_v33 = vshll.u32 %v497_v21, 16 }
 0x23f   :  { %v1151_v38 = vpop.xlane.xlu1 %448  ;;  %v1153_v39 = vpop.xlane.xlu0 %406 }
 0x240   :  { %vm450_vm10 = vcmp.eq.f32.partialorder %v1063_v40, %v1151_v38  ;;  %vm408_vm11 = vcmp.eq.f32.partialorder %v1065_v41, %v1153_v39  ;;  %v413_v28 = vcvt.f32.s32 %v1153_v39 }
 0x241   :  { %v451_v31 = vsel %vm450_vm10, %v446_v44, inf  ;;  %v409_v32 = vsel %vm408_vm11, %v404_v45, inf  ;;  %vm674_vm10 = vcmask 720512   ;;  %vm681_vm11 = vcmask 786112  }
 0x242   :  { %452 = vmin.xlane.f32.xlu1 %v451_v31  ;;  %410 = vmin.xlane.f32.xlu0 %v409_v32  ;;  %v1220_v44 = vshll.u32 %v413_v28, 16  ;;  %v1225_v31 = vadd.s32 4294967232, %v980_v56 }
 0x243   :  { %v1161_v46 = vpop.xlane.xlu1 %532  ;;  %v1163_v49 = vpop.xlane.xlu0 %434 }
 0x244   :  { %vm534_vm12 = vcmp.eq.f32.partialorder %v1080_v48, %v1161_v46  ;;  %vm436_vm13 = vcmp.eq.f32.partialorder %v1076_v47, %v1163_v49  ;;  %v539_v36 = vcvt.f32.s32 %v1161_v46  ;;  %v441_v37 = vcvt.f32.s32 %v1163_v49 }
 0x245   :  { %v535_v40 = vsel %vm534_vm12, %v530_v52, inf  ;;  %v437_v41 = vsel %vm436_vm13, %v432_v54, inf  ;;  %v1234_v54 = vadd.s32 4294967208, %v980_v56  ;;  %vm688_vm12 = vcmask 851712  }
 0x246   :  { %536 = vmin.xlane.f32.xlu1 %v535_v40  ;;  %438 = vmin.xlane.f32.xlu0 %v437_v41  ;;  %v1229_v49 = vshll.u32 %v539_v36, 16  ;;  %v1231_v52 = vshll.u32 %v441_v37, 16  ;;  %v613_v41 = vadd.s32 4294967280, %v980_v56  ;;  %vm695_vm13 = vcmask 917312  }
 0x247   :  { %v1170_v61 = vpop.xlane.xlu1 %560  ;;  %v1172_v50 = vpop.xlane.xlu0 %518 }
 0x248   :  { %vm562_vm14 = vcmp.eq.f32.partialorder %v1092_v57, %v1170_v61  ;;  %vm520_vm15 = vcmp.eq.f32.partialorder %v1094_v53, %v1172_v50  ;;  %v1185_v57 = vshrl.u32 %v312_v55, 7  ;;  %v606_v53 = vadd.s32 4294967288, %v980_v56 }
 0x249   :  { %v563_v48 = vsel %vm562_vm14, %v558_v62, inf  ;;  %v521_v47 = vsel %vm520_vm15, %v516_v63, inf  ;;  %v427_v55 = vcvt.f32.s32 %v1141_v30  ;;  %v567_v32 = vcvt.f32.s32 %v1170_v61 }
 0x24a   :  { %564 = vmin.xlane.f32.xlu1 %v563_v48  ;;  %522 = vmin.xlane.f32.xlu0 %v521_v47  ;;  %v609_v8 = vsub.s32 %v606_v53, %v1185_v57  ;;  %v604_v18 = vsub.s32 %v980_v56, %v1185_v57  ;;  %v665_v45 = vsub.s32 %v1207_v29, %v1185_v57  ;;  %v525_v35 = vcvt.f32.s32 %v1172_v50 }
 0x24b   :  { %v1178_v4 = vpop.xlane.xlu0 %546  ;;  %v428_v30 = vshll.u32 %v427_v55, 16  ;;  %v658_v48 = vsub.s32 %v1225_v31, %v1185_v57  ;;  %v1249_v6 = vshll.u32 %v567_v32, 16  ;;  %v627_v53 = vadd.s32 4294967264, %v980_v56 }
 0x24c   :  { %vm548_vm0 = vcmp.eq.f32.partialorder %v1099_v58, %v1178_v4  ;;  %v469_v58 = vcvt.f32.s32 %v1123_v17  ;;  %v455_v17 = vcvt.f32.s32 %v1151_v38  ;;  %v620_v38 = vadd.s32 4294967272, %v980_v56 }
 0x24d   :  { %v549_v51 = vsel %vm548_vm0, %v544_v5, inf  ;;  %v553_v62 = vcvt.f32.s32 %v1178_v4  ;;  %v1244_v5 = vadd.s32 4294967256, %v980_v56  ;;  %v1251_v7 = vshll.u32 %v525_v35, 16 }
 0x24e   :  { %550 = vmin.xlane.f32.xlu0 %v549_v51  ;;  %v1201_v22 = vshll.u32 %v469_v58, 16  ;;  %v1217_v27 = vshll.u32 %v455_v17, 16  ;;  %v623_v61 = vsub.s32 %v620_v38, %v1185_v57  ;;  %v1247_v51 = vadd.s32 4294967216, %v980_v56 }
 0x24f   :  { %v1254_v4 = vadd.s32 4294967240, %v980_v56  ;;  %v1261_v58 = vadd.s32 4294967192, %v980_v56  ;;  %v1263_v10 = vshll.u32 %v553_v62, 16  ;;  %v637_v21 = vsub.s32 %v1244_v5, %v1185_v57 }
 0x250   :  { %v683_v35 = vadd.s32 4294967200, %v980_v56  ;;  %vm702_vm14 = vcmask 982912   ;;  %vm709_vm15 = vcmask 1048512  }
 0x2ba   :  { %v369_v60 = vpop.xlane.xlu1 %368 }
 0x2bb   :  { %v370_v3 = vcvt.f32.s32 %v369_v60  ;;  %v679_v60 = vsub.s32 %v1234_v54, %v1185_v57 }
 0x2bd   :  { %v373_v20 = vadd.s32 %v372_v59, %v370_v3  ;;  %v616_v59 = vsub.s32 %v613_v41, %v1185_v57 }
 0x2be   :  { %v1198_v9 = vpop.xlane.xlu1 %480  ;;  %v355_v13 = vpop.xlane.xlu0 %354 }
 0x2bf   :  { %v356_v19 = vcvt.f32.s32 %v355_v13  ;;  %v571_v16 = vcvt.s32.f32 %v373_v20  ;;  %v641_v13 = vadd.s32 4294967248, %v980_v56 }
 0x2c1   :  { %v359_v26 = vadd.s32 %v358_v14, %v356_v19  ;;  %v610_v42 = vrot.slane %v571_v16, %v609_v8  ;;  %v672_v8 = vsub.s32 %v1247_v51, %v1185_v57  ;;  %v651_v14 = vsub.s32 %v1254_v4, %v1185_v57 }
 0x2c2   :  { %v397_v24 = vpop.xlane.xlu1 %396  ;;  %v1215_v25 = vpop.xlane.xlu0 %466  ;;  %v693_v16 = vsub.s32 %v1261_v58, %v1185_v57  ;;  %v644_v38 = vsub.s32 %v641_v13, %v1185_v57 }
 0x2c3   :  { %v570_v34 = vcvt.s32.f32 %v359_v26  ;;  %v398_v39 = vcvt.f32.s32 %v397_v24  ;;  %v468_v17 = vcvt.f32.s32 %v1215_v25  ;;  %v482_v24 = vcvt.f32.s32 %v1198_v9 }
 0x2c5   :  { %v605_v46 = vrot.slane %v570_v34, %v604_v18  ;;  %v401_v50 = vadd.s32 %v400_v11, %v398_v39  ;;  %v630_v11 = vsub.s32 %v627_v53, %v1185_v57  ;;  %v1280_v39 = vadd.s32 4294967176, %v980_v56 }
 0x2c6   :  { %v1236_v40 = vpop.xlane.xlu1 %508 }
 0x2c7   :  { %v383_v43 = vpop.xlane.xlu0 %382  ;;  %v612_v63 = vsel %vm611_vm1, %v610_v42, %v605_v46  ;;  %v573_v1 = vcvt.s32.f32 %v401_v50  ;;  %v471_v42 = vadd.s32 %v1201_v22, %v468_v17  ;;  %v707_v5 = vsub.s32 %v1280_v39, %v1185_v57 }
 0x2c8   :  { %v384_v47 = vcvt.f32.s32 %v383_v43 }
 0x2c9   :  { %v624_v18 = vrot.slane %v573_v1, %v623_v61  ;;  %v485_v61 = vadd.s32 %v1193_v12, %v482_v24  ;;  %v578_v4 = vcvt.s32.f32 %v471_v42 }
 0x2ca   :  { %v387_v2 = vadd.s32 %v386_v15, %v384_v47 }
 0x2cb   :  { %v425_v0 = vpop.xlane.xlu1 %424  ;;  %v495_v3 = vpop.xlane.xlu0 %494  ;;  %v579_v13 = vcvt.s32.f32 %v485_v61 }
 0x2cc   :  { %v426_v20 = vcvt.f32.s32 %v425_v0  ;;  %v572_v55 = vcvt.s32.f32 %v387_v2  ;;  %v496_v25 = vcvt.f32.s32 %v495_v3 }
 0x2ce   :  { %v617_v19 = vrot.slane %v572_v55, %v616_v59  ;;  %v429_v26 = vadd.s32 %v428_v30, %v426_v20  ;;  %v510_v30 = vcvt.f32.s32 %v1236_v40  ;;  %v499_v22 = vadd.s32 %v1211_v33, %v496_v25 }
 0x2cf   :  { %v453_v28 = vpop.xlane.xlu1 %452  ;;  %v411_v15 = vpop.xlane.xlu0 %410 }
 0x2d0   :  { %v454_v36 = vcvt.f32.s32 %v453_v28  ;;  %v412_v37 = vcvt.f32.s32 %v411_v15  ;;  %v619_v34 = vsel %vm618_vm2, %v617_v19, %v612_v63  ;;  %v575_v62 = vcvt.s32.f32 %v429_v26 }
 0x2d1   :  { %v626_v32 = vsel %vm625_vm3, %v624_v18, %v619_v34  ;;  %v513_v53 = vadd.s32 %v1203_v23, %v510_v30  ;;  %v580_v17 = vcvt.s32.f32 %v499_v22  ;;  %v659_v18 = vrot.slane %v578_v4, %v658_v48 }
 0x2d2   :  { %v457_v46 = vadd.s32 %v1217_v27, %v454_v36  ;;  %v415_v9 = vadd.s32 %v1220_v44, %v412_v37  ;;  %v686_v27 = vsub.s32 %v683_v35, %v1185_v57  ;;  %v697_v44 = vadd.s32 4294967184, %v980_v56 }
 0x2d3   :  { %v537_v41 = vpop.xlane.xlu1 %536  ;;  %v439_v43 = vpop.xlane.xlu0 %438  ;;  %v638_v3 = vrot.slane %v575_v62, %v637_v21  ;;  %v581_v23 = vcvt.s32.f32 %v513_v53  ;;  %v666_v37 = vrot.slane %v579_v13, %v665_v45 }
 0x2d4   :  { %v440_v63 = vcvt.f32.s32 %v439_v43  ;;  %v574_v50 = vcvt.s32.f32 %v415_v9  ;;  %v538_v47 = vcvt.f32.s32 %v537_v41  ;;  %v577_v59 = vcvt.s32.f32 %v457_v46 }
 0x2d5   :  { %v680_v34 = vrot.slane %v581_v23, %v679_v60 }
 0x2d6   :  { %v443_v40 = vadd.s32 %v1231_v52, %v440_v63  ;;  %v631_v2 = vrot.slane %v574_v50, %v630_v11  ;;  %v541_v52 = vadd.s32 %v1229_v49, %v538_v47  ;;  %v652_v28 = vrot.slane %v577_v59, %v651_v14 }
 0x2d7   :  { %v565_v0 = vpop.xlane.xlu1 %564  ;;  %v523_v12 = vpop.xlane.xlu0 %522  ;;  %v700_v49 = vsub.s32 %v697_v44, %v1185_v57 }
 0x2d8   :  { %v576_v1 = vcvt.s32.f32 %v443_v40  ;;  %v566_v20 = vcvt.f32.s32 %v565_v0  ;;  %v524_v55 = vcvt.f32.s32 %v523_v12  ;;  %v633_v33 = vsel %vm632_vm4, %v631_v2, %v626_v32 }
 0x2d9   :  { %v640_v56 = vsel %vm639_vm5, %v638_v3, %v633_v33  ;;  %v583_v24 = vcvt.s32.f32 %v541_v52 }
 0x2da   :  { %v645_v19 = vrot.slane %v576_v1, %v644_v38  ;;  %v569_v11 = vadd.s32 %v1249_v6, %v566_v20  ;;  %v527_v21 = vadd.s32 %v1251_v7, %v524_v55  ;;  %v673_v7 = vrot.slane %v580_v17, %v672_v8 }
 0x2db   :  { %v551_v15 = vpop.xlane.xlu0 %550  ;;  %v694_v51 = vrot.slane %v583_v24, %v693_v16 }
 0x2dc   :  { %v647_v26 = vsel %vm646_vm6, %v645_v19, %v640_v56  ;;  %v552_v36 = vcvt.f32.s32 %v551_v15  ;;  %v582_v6 = vcvt.s32.f32 %v527_v21  ;;  %v585_v38 = vcvt.s32.f32 %v569_v11 }
 0x2dd   :  { %v654_v14 = vsel %vm653_vm7, %v652_v28, %v647_v26 }
 0x2de   :  { %v661_v31 = vsel %vm660_vm8, %v659_v18, %v654_v14  ;;  %v555_v48 = vadd.s32 %v1263_v10, %v552_v36  ;;  %v687_v45 = vrot.slane %v582_v6, %v686_v27  ;;  %v708_v60 = vrot.slane %v585_v38, %v707_v5 }
 0x2df   :  { %v668_v29 = vsel %vm667_vm9, %v666_v37, %v661_v31 }
 0x2e0   :  { %v584_v39 = vcvt.s32.f32 %v555_v48  ;;  %v675_v25 = vsel %vm674_vm10, %v673_v7, %v668_v29 }
 0x2e1   :  { %v682_v8 = vsel %vm681_vm11, %v680_v34, %v675_v25 }
 0x2e2   :  { %v701_v10 = vrot.slane %v584_v39, %v700_v49  ;;  %v689_v54 = vsel %vm688_vm12, %v687_v45, %v682_v8 }
 0x2e3   :  { %v696_v32 = vsel %vm695_vm13, %v694_v51, %v689_v54 }
 0x2e4   :  { %v703_v35 = vsel %vm702_vm14, %v701_v10, %v696_v32 }
 0x2e5   :  { %v710_v42 = vsel %vm709_vm15, %v708_v60, %v703_v35 }
 0x2e6   :  { %712 = vst [vmem:[#allocation7] sm:$0x1] %v710_v42 }
 0x2e7   :  { %870 = shalt.err (!%p867_p6)
}
 0x2e8   :  { %s871_s17 = scalar_lea.hbm %s1338_s3, 16 }
 0x2e9   :  { %p872_p7 = scmp.ne.s32.totalorder %s1338_s3, %s871_s17  ;;  %p875_p8 = scmp.lt.u32.totalorder %s871_s17, %s1338_s3 }
 0x2eb   :  { %p877_p9 = pnand %p875_p8, %p872_p7 }
 0x2ed   :  { %880 = shalt.err (!%p877_p9)
}
 0x2ee   :  { %722 = dma.vmem_to_hbm [thread:$0]  %s720_s12, 16, %s1338_s3, [#allocation4]  }
 0x2ef   :  { %885 = dma.done.wait [#allocation4], 16  }
 0x2f0   :  { %886 = vsyncadd [#allocation4], 4294967280 }
 0x2f1   :  { %726 = vsyncpa [#allocation3], 1 }
 0x2f2   :  { %727 = vsyncpa [#allocation6], 1 }
 0x2f3   :  { %728 = vsyncpa [#allocation4], 1 }

</bundles_post_ra>
